<compile_context>
chip_gen: v7x
topology: tpu7x:2x2x1
jax: 0.10.0
libtpu: 0.0.40
codegen_flags: <defaults>
</compile_context>

<pallas_src>
import jax
import jax.numpy as jnp
from jax.experimental import pallas as pl
from jax.experimental.pallas import tpu as pltpu


NEURONS_1 = 512
NEURONS_2 = 512
NUM_TARGETS = 8          # stand-in for config.NUM_TARGETS
OUT_PAD = 128            # lane-dense output head
BN_EPS = 1e-5


def _round_up(n, m):
    return ((n + m - 1) // m) * m


def _pick_tile_b(b):
    """Batch tile: big tiles amortize ~0.35 us/grid-step overhead, but keep >=2
    grid steps when B allows it so v7x's two TensorCores both get work."""
    if b <= 128:
        return b                     # single tile == full batch dim (always a legal block)
    for t in (512, 256, 128):        # largest tile that still leaves >=2 grid steps
        if b >= 2 * t:
            return t
    # 128 < b < 256: two roughly-equal tiles, rounded to bf16 sublane packing (16)
    return _round_up((b + 1) // 2, 16)


def _mlp_kernel(x_ref, w1_ref, b1_ref, w2_ref, b2_ref, w3_ref, b3_ref, o_ref):
    # Layer 1: (weight_norm + eval-BN folded) linear -> ReLU.
    # bf16 MXU inputs, f32 accumulation, f32 epilogue (v5e-safe).
    h = jnp.dot(x_ref[...], w1_ref[...], preferred_element_type=jnp.float32)
    h = jnp.maximum(h + b1_ref[...], 0.0)
    # Dropout(p=0.5): identity in eval mode.

    # Layer 2: (folded) linear -> ReLU.
    h = jnp.dot(h.astype(jnp.bfloat16), w2_ref[...],
                preferred_element_type=jnp.float32)
    h = jnp.maximum(h + b2_ref[...], 0.0)
    # Dropout(p=0.5): identity in eval mode.

    # Layer 3: output head (padded to 128 lanes, bf16 writeback).
    out = jnp.dot(h.astype(jnp.bfloat16), w3_ref[...],
                  preferred_element_type=jnp.float32)
    o_ref[...] = (out + b3_ref[...]).astype(o_ref.dtype)


def net_forward(x, kparams):
    """x: [B, in_features] f32.  kparams: folded/padded/bf16 kernel params."""
    B, K = x.shape
    H1 = kparams["w1"].shape[1]
    H2, out_pad = kparams["w3"].shape

    tile_b = _pick_tile_b(B)
    grid_b = pl.cdiv(B, tile_b)

    # Single convert in the wrapper: halves streamed activation bytes and removes
    # the per-tile in-kernel cast.  No zero-pad round trip of x through HBM.
    x_bf16 = x.astype(jnp.bfloat16)

    out = pl.pallas_call(
        _mlp_kernel,
        out_shape=jax.ShapeDtypeStruct((B, out_pad), jnp.bfloat16),
        grid_spec=pltpu.PrefetchScalarGridSpec(
            num_scalar_prefetch=0,
            grid=(grid_b,),
            in_specs=[
                pl.BlockSpec((tile_b, K), lambda i: (i, 0)),     # x tile (full K last dim)
                pl.BlockSpec((K, H1), lambda i: (0, 0)),         # w1 (VMEM-resident)
                pl.BlockSpec((1, H1), lambda i: (0, 0)),         # b1 (f32)
                pl.BlockSpec((H1, H2), lambda i: (0, 0)),        # w2 (VMEM-resident)
                pl.BlockSpec((1, H2), lambda i: (0, 0)),         # b2 (f32)
                pl.BlockSpec((H2, out_pad), lambda i: (0, 0)),   # w3 (VMEM-resident)
                pl.BlockSpec((1, out_pad), lambda i: (0, 0)),    # b3 (f32)
            ],
            out_specs=pl.BlockSpec((tile_b, out_pad), lambda i: (i, 0)),
        ),
        compiler_params=pltpu.CompilerParams(
            dimension_semantics=("parallel",)),
    )(x_bf16, kparams["w1"], kparams["b1"], kparams["w2"], kparams["b2"],
      kparams["w3"], kparams["b3"])

    return out[:, :NUM_TARGETS].astype(jnp.float32)


def make_params(key, in_features):
    """Build raw (reference) params and folded/padded/bf16 kernel params."""
    keys = iter(jax.random.split(key, 32))

    def linear_raw(out_f, in_f):
        v = jax.random.normal(next(keys), (out_f, in_f), jnp.float32) * 0.05
        g = jax.random.uniform(next(keys), (out_f,), jnp.float32, 0.5, 1.5)
        b = jax.random.normal(next(keys), (out_f,), jnp.float32) * 0.01
        # PyTorch weight_norm default dim=0: per-output-row norm of V.
        norm = jnp.sqrt(jnp.sum(v * v, axis=1, keepdims=True))
        w_eff = (g[:, None] / norm) * v          # [out, in]
        return w_eff.T, b                        # kernel layout [in, out], [out]

    def bn_raw(num_f):
        gamma = jax.random.uniform(next(keys), (num_f,), jnp.float32, 0.5, 1.5)
        beta = jax.random.normal(next(keys), (num_f,), jnp.float32) * 0.1
        rmean = jax.random.normal(next(keys), (num_f,), jnp.float32) * 0.1
        rvar = jax.random.uniform(next(keys), (num_f,), jnp.float32, 0.5, 1.5)
        scale = gamma / jnp.sqrt(rvar + BN_EPS)  # eval-mode BN -> affine
        shift = beta - rmean * scale
        return scale, shift

    w1, b1 = linear_raw(NEURONS_1, in_features)
    s1, t1 = bn_raw(NEURONS_1)
    w2, b2 = linear_raw(NEURONS_2, NEURONS_1)
    s2, t2 = bn_raw(NEURONS_2)
    w3, b3 = linear_raw(NUM_TARGETS, NEURONS_2)

    ref = dict(w1=w1, b1=b1, s1=s1, t1=t1,
               w2=w2, b2=b2, s2=s2, t2=t2,
               w3=w3, b3=b3)

    # Fold BN affine into the linear weights/biases (f32), then pad the output
    # head to 128 lanes and cast weights to bf16.
    w1f = w1 * s1[None, :]
    b1f = b1 * s1 + t1
    w2f = w2 * s2[None, :]
    b2f = b2 * s2 + t2

    w3p = jnp.zeros((NEURONS_2, OUT_PAD), jnp.float32).at[:, :NUM_TARGETS].set(w3)
    b3p = jnp.zeros((OUT_PAD,), jnp.float32).at[:NUM_TARGETS].set(b3)

    kern = dict(
        w1=w1f.astype(jnp.bfloat16), b1=b1f[None, :],
        w2=w2f.astype(jnp.bfloat16), b2=b2f[None, :],
        w3=w3p.astype(jnp.bfloat16), b3=b3p[None, :],
    )
    return kern, ref


def reference_forward_f32(x, ref):
    # Pure-f32 reference of the original module's eval-mode forward pass.
    h = x @ ref["w1"] + ref["b1"]
    h = jnp.maximum(h * ref["s1"] + ref["t1"], 0.0)
    h = h @ ref["w2"] + ref["b2"]
    h = jnp.maximum(h * ref["s2"] + ref["t2"], 0.0)
    return h @ ref["w3"] + ref["b3"]


def reference_forward_kernel_path(x, kparams):
    # Mirrors the kernel's dtype path (bf16 inputs/output, f32 accumulation/epilogue).
    xb = x.astype(jnp.bfloat16)
    h = jnp.dot(xb, kparams["w1"], preferred_element_type=jnp.float32) + kparams["b1"]
    h = jnp.maximum(h, 0.0)
    h = jnp.dot(h.astype(jnp.bfloat16), kparams["w2"],
                preferred_element_type=jnp.float32) + kparams["b2"]
    h = jnp.maximum(h, 0.0)
    out = jnp.dot(h.astype(jnp.bfloat16), kparams["w3"],
                  preferred_element_type=jnp.float32) + kparams["b3"]
    return out.astype(jnp.bfloat16)[:, :NUM_TARGETS].astype(jnp.float32)


if __name__ == "__main__":
    key = jax.random.PRNGKey(0)
    kx, kp = jax.random.split(key)

    batch = 8
    in_features = 32
    x = jax.random.normal(kx, (batch, in_features), jnp.float32)

    kparams, rparams = make_params(kp, in_features)

    out = net_forward(x, kparams)
    out = jax.block_until_ready(out)
    assert out.shape == (batch, NUM_TARGETS)

    # Tight check: same bf16/f32-accumulate path as the kernel.
    ref_bf16 = reference_forward_kernel_path(x, kparams)
    assert jnp.allclose(out, ref_bf16, atol=1e-3, rtol=1e-3), "mismatch vs bf16-path reference"

    # Sanity check against the original full-f32 module semantics (bf16 quantization slack).
    ref_f32 = reference_forward_f32(x, rparams)
    assert jnp.allclose(out, ref_f32, atol=5e-2, rtol=5e-2), "mismatch vs f32 module reference"

    print("KERNEL_OK")
</pallas_src>

<mosaic_0001>
module attributes {stable_mosaic.version = 11 : i64} {
  func.func @_mlp_kernel(%arg0: i32, %arg1: memref<8x32xbf16, #tpu.memory_space<vmem>>, %arg2: memref<32x512xbf16, #tpu.memory_space<vmem>>, %arg3: memref<1x512xf32, #tpu.memory_space<vmem>>, %arg4: memref<512x512xbf16, #tpu.memory_space<vmem>>, %arg5: memref<1x512xf32, #tpu.memory_space<vmem>>, %arg6: memref<512x128xbf16, #tpu.memory_space<vmem>>, %arg7: memref<1x128xf32, #tpu.memory_space<vmem>>, %arg8: memref<8x128xbf16, #tpu.memory_space<vmem>>) attributes {dimension_semantics = [#tpu.dimension_semantics<parallel>], iteration_bounds = array<i64: 1>, scalar_prefetch = 0 : i64, scratch_operands = 0 : i64, tpu.core_type = #tpu.core_type<tc>, window_params = [{transform_indices = @transform_0, window_bounds = array<i64: 8, 32>}, {pipeline_mode = #tpu.pipeline_mode<synchronous>, transform_indices = @transform_1, window_bounds = array<i64: 32, 512>}, {pipeline_mode = #tpu.pipeline_mode<synchronous>, transform_indices = @transform_2, window_bounds = array<i64: 1, 512>}, {pipeline_mode = #tpu.pipeline_mode<synchronous>, transform_indices = @transform_3, window_bounds = array<i64: 512, 512>}, {pipeline_mode = #tpu.pipeline_mode<synchronous>, transform_indices = @transform_4, window_bounds = array<i64: 1, 512>}, {pipeline_mode = #tpu.pipeline_mode<synchronous>, transform_indices = @transform_5, window_bounds = array<i64: 512, 128>}, {pipeline_mode = #tpu.pipeline_mode<synchronous>, transform_indices = @transform_6, window_bounds = array<i64: 1, 128>}, {transform_indices = @transform_7, window_bounds = array<i64: 8, 128>}]} {
    %c0 = arith.constant 0 : index
    %c0_0 = arith.constant 0 : index
    %0 = vector.load %arg1[%c0, %c0_0] : memref<8x32xbf16, #tpu.memory_space<vmem>>, vector<8x32xbf16>
    %c0_1 = arith.constant 0 : index
    %c0_2 = arith.constant 0 : index
    %1 = vector.load %arg2[%c0_1, %c0_2] : memref<32x512xbf16, #tpu.memory_space<vmem>>, vector<32x512xbf16>
    %cst = arith.constant dense<0.000000e+00> : vector<8x512xf32>
    %2 = tpu.matmul %0, %1, %cst {dimension_numbers = #tpu.dot_dimension_numbers<[1], [0], [0], [1], [0, 0, 1, 1], [], []>} : vector<8x32xbf16>, vector<32x512xbf16>, vector<8x512xf32> -> vector<8x512xf32>
    %c0_3 = arith.constant 0 : index
    %c0_4 = arith.constant 0 : index
    %3 = vector.load %arg3[%c0_3, %c0_4] : memref<1x512xf32, #tpu.memory_space<vmem>>, vector<1x512xf32>
    %4 = vector.broadcast %3 : vector<1x512xf32> to vector<8x512xf32>
    %5 = arith.addf %2, %4 : vector<8x512xf32>
    %cst_5 = arith.constant 0.000000e+00 : f32
    %6 = vector.broadcast %cst_5 : f32 to vector<8x512xf32>
    %7 = arith.maximumf %5, %6 : vector<8x512xf32>
    %8 = arith.truncf %7 : vector<8x512xf32> to vector<8x512xbf16>
    %c0_6 = arith.constant 0 : index
    %c0_7 = arith.constant 0 : index
    %9 = vector.load %arg4[%c0_6, %c0_7] : memref<512x512xbf16, #tpu.memory_space<vmem>>, vector<512x512xbf16>
    %cst_8 = arith.constant dense<0.000000e+00> : vector<8x512xf32>
    %10 = tpu.matmul %8, %9, %cst_8 {dimension_numbers = #tpu.dot_dimension_numbers<[1], [0], [0], [1], [0, 0, 1, 1], [], []>} : vector<8x512xbf16>, vector<512x512xbf16>, vector<8x512xf32> -> vector<8x512xf32>
    %c0_9 = arith.constant 0 : index
    %c0_10 = arith.constant 0 : index
    %11 = vector.load %arg5[%c0_9, %c0_10] : memref<1x512xf32, #tpu.memory_space<vmem>>, vector<1x512xf32>
    %12 = vector.broadcast %11 : vector<1x512xf32> to vector<8x512xf32>
    %13 = arith.addf %10, %12 : vector<8x512xf32>
    %cst_11 = arith.constant 0.000000e+00 : f32
    %14 = vector.broadcast %cst_11 : f32 to vector<8x512xf32>
    %15 = arith.maximumf %13, %14 : vector<8x512xf32>
    %16 = arith.truncf %15 : vector<8x512xf32> to vector<8x512xbf16>
    %c0_12 = arith.constant 0 : index
    %c0_13 = arith.constant 0 : index
    %17 = vector.load %arg6[%c0_12, %c0_13] : memref<512x128xbf16, #tpu.memory_space<vmem>>, vector<512x128xbf16>
    %cst_14 = arith.constant dense<0.000000e+00> : vector<8x128xf32>
    %18 = tpu.matmul %16, %17, %cst_14 {dimension_numbers = #tpu.dot_dimension_numbers<[1], [0], [0], [1], [0, 0, 1, 1], [], []>} : vector<8x512xbf16>, vector<512x128xbf16>, vector<8x128xf32> -> vector<8x128xf32>
    %c0_15 = arith.constant 0 : index
    %c0_16 = arith.constant 0 : index
    %19 = vector.load %arg7[%c0_15, %c0_16] : memref<1x128xf32, #tpu.memory_space<vmem>>, vector<1x128xf32>
    %20 = vector.broadcast %19 : vector<1x128xf32> to vector<8x128xf32>
    %21 = arith.addf %18, %20 : vector<8x128xf32>
    %22 = arith.truncf %21 : vector<8x128xf32> to vector<8x128xbf16>
    %c0_17 = arith.constant 0 : index
    %c0_18 = arith.constant 0 : index
    %23 = vector.load %arg8[%c0_17, %c0_18] : memref<8x128xbf16, #tpu.memory_space<vmem>>, vector<8x128xbf16>
    tpu.vector_store %arg8[%c0_17, %c0_18], %22 {strides = array<i32>} : memref<8x128xbf16, #tpu.memory_space<vmem>>, vector<8x128xbf16>,
    return
  }
  func.func @transform_0(%arg0: i32) -> (i32, i32) {
    %c0_i32 = arith.constant 0 : i32
    %c0_i32_0 = arith.constant 0 : i32
    return %arg0, %c0_i32 : i32, i32
  }
  func.func @transform_1(%arg0: i32) -> (i32, i32) {
    %c0_i32 = arith.constant 0 : i32
    %c0_i32_0 = arith.constant 0 : i32
    %c0_i32_1 = arith.constant 0 : i32
    return %c0_i32, %c0_i32_0 : i32, i32
  }
  func.func @transform_2(%arg0: i32) -> (i32, i32) {
    %c0_i32 = arith.constant 0 : i32
    %c0_i32_0 = arith.constant 0 : i32
    %c0_i32_1 = arith.constant 0 : i32
    return %c0_i32, %c0_i32_0 : i32, i32
  }
  func.func @transform_3(%arg0: i32) -> (i32, i32) {
    %c0_i32 = arith.constant 0 : i32
    %c0_i32_0 = arith.constant 0 : i32
    %c0_i32_1 = arith.constant 0 : i32
    return %c0_i32, %c0_i32_0 : i32, i32
  }
  func.func @transform_4(%arg0: i32) -> (i32, i32) {
    %c0_i32 = arith.constant 0 : i32
    %c0_i32_0 = arith.constant 0 : i32
    %c0_i32_1 = arith.constant 0 : i32
    return %c0_i32, %c0_i32_0 : i32, i32
  }
  func.func @transform_5(%arg0: i32) -> (i32, i32) {
    %c0_i32 = arith.constant 0 : i32
    %c0_i32_0 = arith.constant 0 : i32
    %c0_i32_1 = arith.constant 0 : i32
    return %c0_i32, %c0_i32_0 : i32, i32
  }
  func.func @transform_6(%arg0: i32) -> (i32, i32) {
    %c0_i32 = arith.constant 0 : i32
    %c0_i32_0 = arith.constant 0 : i32
    %c0_i32_1 = arith.constant 0 : i32
    return %c0_i32, %c0_i32_0 : i32, i32
  }
  func.func @transform_7(%arg0: i32) -> (i32, i32) {
    %c0_i32 = arith.constant 0 : i32
    %c0_i32_0 = arith.constant 0 : i32
    return %arg0, %c0_i32 : i32, i32
  }
}

</mosaic_0001>

<bundles_post_ra>
// kernel: tpu_custom_call.1
= control target key start
LH: loop header
LB: loop body
LE: loop exit
PB: predicated region body
PF: predicated region fallthrough
CT: control target
= control target key end

     0   :  { %12 = vsyncpa [#allocation3], 0  ;;  %s2317_s0 = inlined_call_operand.hbm [shape: bf16[8,32], index: 0, kind: input, shape index: {}]   ;;  %s2318_s1 = inlined_call_operand.hbm [shape: bf16[32,512], index: 1, kind: input, shape index: {}]   ;;  %s2319_s2 = inlined_call_operand.vmem [shape: f32[1,512], index: 2, kind: input, shape index: {}]   ;;  %s2320_s3 = inlined_call_operand.hbm [shape: bf16[512,512], index: 3, kind: input, shape index: {}]   ;;  %s2321_s4 = inlined_call_operand.vmem [shape: f32[1,512], index: 4, kind: input, shape index: {}]   ;;  %s2322_s5 = inlined_call_operand.hbm [shape: bf16[512,128], index: 5, kind: input, shape index: {}]   ;;  %s2323_s6 = inlined_call_operand.vmem [shape: f32[1,128], index: 6, kind: input, shape index: {}]   ;;  %s2324_s7 = inlined_call_operand.hbm [shape: bf16[8,128], index: 7, kind: output, shape index: {}]  }
   0x1   :  { %13 = vsyncpa [#allocation6], 0 }
   0x2   :  { %14 = vsyncpa [#allocation9], 0 }
   0x3   :  { %15 = vsyncpa [#allocation4], 0  ;;  %s2161_s24 = smov [#allocation5]   ;;  %s2043_s28 = scalar_lea.hbm %s2318_s1, 1024 }
   0x4   :  { %s31_s25 = sshll.u32 %s2161_s24, 4  ;;  %p2044_p0 = scmp.ne.s32.totalorder %s2318_s1, %s2043_s28  ;;  %s32_s25 = int_to_ptr.vmem [resolvable:$true] %s31_s25 }
   0x5   :  { %p2047_p1 = scmp.lt.u32.totalorder %s2043_s28, %s2318_s1 }
   0x7   :  { %p2049_p2 = pnand %p2047_p1, %p2044_p0 }
   0x9   :  { %2052 = shalt.err (!%p2049_p2)
}
   0xa   :  { %s2053_s10 = scalar_lea.vmem %s32_s25, 1024  ;;  %p2058_p4 = scmp.lt.s32.totalorder %s32_s25, %s32_s25 }
   0xb   :  { %p2054_p3 = scmp.ne.s32.totalorder %s32_s25, %s2053_s10  ;;  %p2059_p5 = scmp.lt.s32.totalorder %s2053_s10, %s2053_s10 }
   0xd   :  { %p2060_p6 = por %p2059_p5, %p2058_p4 }
   0xf   :  { %p2061_p7 = pnand %p2060_p6, %p2054_p3 }
  0x11   :  { %2064 = shalt.err (!%p2061_p7)
}
  0x12   :  { %s2162_s11 = smov 256   ;;  %s2163_s12 = smov 16  }
  0x13   :  { %37 = dma.hbm_to_vmem [thread:$0]  %s2318_s1, 1024, %s32_s25, [#allocation6], %s2162_s11, %s2162_s11, %s2163_s12  }
  0x14   :  { %s2164_s15 = smov [#allocation2]   ;;  %s2165_s17 = smov [#allocation7]  }
  0x15   :  { %s22_s16 = sshll.u32 %s2164_s15, 4  ;;  %s45_s18 = sshll.u32 %s2165_s17, 4  ;;  %s23_s16 = int_to_ptr.vmem [resolvable:$true] %s22_s16  ;;  %s46_s18 = int_to_ptr.vmem [resolvable:$true] %s45_s18 }
  0x16   :  { %s2065_s21 = scalar_lea.hbm %s2317_s0, 64 }
  0x17   :  { %p2066_p8 = scmp.ne.s32.totalorder %s2317_s0, %s2065_s21  ;;  %p2069_p9 = scmp.lt.u32.totalorder %s2065_s21, %s2317_s0 }
  0x19   :  { %p2071_p10 = pnand %p2069_p9, %p2066_p8 }
  0x1b   :  { %2074 = shalt.err (!%p2071_p10)
}
  0x1c   :  { %s2075_s1 = scalar_lea.vmem %s23_s16, 64  ;;  %p2080_p12 = scmp.lt.s32.totalorder %s23_s16, %s23_s16 }
  0x1d   :  { %p2076_p11 = scmp.ne.s32.totalorder %s23_s16, %s2075_s1  ;;  %p2081_p13 = scmp.lt.s32.totalorder %s2075_s1, %s2075_s1 }
  0x1f   :  { %p2082_p0 = por %p2081_p13, %p2080_p12 }
  0x21   :  { %p2083_p1 = pnand %p2082_p0, %p2076_p11 }
  0x23   :  { %2086 = shalt.err (!%p2083_p1)
}
  0x24   :  { %25 = dma.hbm_to_vmem [thread:$0]  %s2317_s0, 64, %s23_s16, [#allocation3]  }
  0x25   :  { %s2087_s30 = scalar_lea.hbm %s2320_s3, 16384 }
  0x26   :  { %p2088_p2 = scmp.ne.s32.totalorder %s2320_s3, %s2087_s30  ;;  %p2091_p3 = scmp.lt.u32.totalorder %s2087_s30, %s2320_s3 }
  0x28   :  { %p2093_p4 = pnand %p2091_p3, %p2088_p2 }
  0x2a   :  { %2096 = shalt.err (!%p2093_p4)
}
  0x2b   :  { %s2097_s14 = scalar_lea.vmem %s46_s18, 16384  ;;  %p2102_p6 = scmp.lt.s32.totalorder %s46_s18, %s46_s18 }
  0x2c   :  { %p2098_p5 = scmp.ne.s32.totalorder %s46_s18, %s2097_s14  ;;  %p2103_p7 = scmp.lt.s32.totalorder %s2097_s14, %s2097_s14 }
  0x2e   :  { %p2104_p8 = por %p2103_p7, %p2102_p6 }
  0x30   :  { %p2105_p9 = pnand %p2104_p8, %p2098_p5 }
  0x32   :  { %2108 = shalt.err (!%p2105_p9)
}
  0x33   :  { %51 = dma.hbm_to_vmem [thread:$0]  %s2320_s3, 16384, %s46_s18, [#allocation6], %s2162_s11, %s2162_s11, %s2163_s12  }
  0x34   :  { %s2166_s16 = smov [#allocation8]   ;;  %s2109_s21 = scalar_lea.hbm %s2322_s5, 4096 }
  0x35   :  { %s59_s17 = sshll.u32 %s2166_s16, 4  ;;  %p2110_p10 = scmp.ne.s32.totalorder %s2322_s5, %s2109_s21  ;;  %s60_s17 = int_to_ptr.vmem [resolvable:$true] %s59_s17 }
  0x36   :  { %p2113_p11 = scmp.lt.u32.totalorder %s2109_s21, %s2322_s5 }
  0x38   :  { %p2115_p12 = pnand %p2113_p11, %p2110_p10 }
  0x3a   :  { %2118 = shalt.err (!%p2115_p12)
}
  0x3b   :  { %s2119_s1 = scalar_lea.vmem %s60_s17, 4096  ;;  %p2124_p0 = scmp.lt.s32.totalorder %s60_s17, %s60_s17 }
  0x3c   :  { %p2120_p13 = scmp.ne.s32.totalorder %s60_s17, %s2119_s1  ;;  %p2125_p1 = scmp.lt.s32.totalorder %s2119_s1, %s2119_s1 }
  0x3e   :  { %p2126_p2 = por %p2125_p1, %p2124_p0 }
  0x40   :  { %p2127_p3 = pnand %p2126_p2, %p2120_p13 }
  0x42   :  { %2130 = shalt.err (!%p2127_p3)
}
  0x43   :  { %s2167_s3 = smov 64   ;;  %s2168_s11 = smov 4  }
  0x44   :  { %65 = dma.hbm_to_vmem [thread:$0]  %s2322_s5, 4096, %s60_s17, [#allocation9], %s2167_s3, %s2167_s3, %s2168_s11  }
  0x45   :  { %2153 = dma.done.wait [#allocation3], 64  }
  0x46   :  { %2154 = vsyncadd [#allocation3], 4294967232 }
  0x47   :  { %2155 = dma.done.wait [#allocation6], 17408  }
  0x48   :  { %2156 = vsyncadd [#allocation6], 4294949888 }
  0x49   :  { %2157 = dma.done.wait [#allocation9], 4096  }
  0x4a   :  { %2158 = vsyncadd [#allocation9], 4294963200  ;;  %v2169_v0 = vmov 0   ;;  %v1807_v1 = vld [vmem:[#allocation5 + $0x4] ss:$16 sps:$4 sm:$0xff]   ;;  %vm152_vm0 = vcmask 261120  }
  0x4b   :  { %188 = vmatprep.mubr.bf16.mxu0 %v2169_v0  ;;  %229 = vmatprep.mubr.bf16.mxu1 %v2169_v0  ;;  %v1809_v2 = vld [vmem:[#allocation5] ss:$16 sps:$4 sm:$0xff]   ;;  %v1810_v3 = vld [vmem:[#allocation5 + $0x24] ss:$16 sps:$4 sm:$0xff]   ;;  %v1813_v5 = vld [vmem:[#allocation5 + $0xc] ss:$16 sps:$4 sm:$0xff]  }
  0x4c   :  { %156 = vmatprep.subr.bf16.mxu0 %v1807_v1  ;;  %v1812_v4 = vld [vmem:[#allocation5 + $0x20] ss:$16 sps:$4 sm:$0xff]   ;;  %v1815_v6 = vld [vmem:[#allocation5 + $0x8] ss:$16 sps:$4 sm:$0xff]   ;;  %v81_v7 = vld [vmem:[#allocation2] sm:$0xf]  ;;  %197 = vmatprep.subr.bf16.mxu1 %v1813_v5 }
  0x4d   :  { %157 = vmatpush1.bf16.msra.mxu0 %v1809_v2  ;;  %v1816_v8 = vld [vmem:[#allocation5 + $0x2c] ss:$16 sps:$4 sm:$0xff]   ;;  %198 = vmatpush1.bf16.msra.mxu1 %v1815_v6  ;;  %v1818_v9 = vld [vmem:[#allocation5 + $0x28] ss:$16 sps:$4 sm:$0xff]   ;;  %v1821_v10 = vld [vmem:[#allocation7 + $0x4] ss:$16 sps:$4 sm:$0xff]  }
  0x4e   :  { %158 = vmatprep.subr.bf16.mxu0 %v1810_v3  ;;  %199 = vmatprep.subr.bf16.mxu1 %v1816_v8  ;;  %v1819_v11 = vld [vmem:[#allocation7] ss:$16 sps:$4 sm:$0xff]   ;;  %v1824_v12 = vld [vmem:[#allocation7 + $0xc] ss:$16 sps:$4 sm:$0xff]   ;;  %v1827_v13 = vld [vmem:[#allocation7 + $0x24] ss:$16 sps:$4 sm:$0xff]  }
  0x4f   :  { %v1822_v14 = vld [vmem:[#allocation7 + $0x8] ss:$16 sps:$4 sm:$0xff]   ;;  %v1825_v15 = vld [vmem:[#allocation7 + $0x20] ss:$16 sps:$4 sm:$0xff]   ;;  %v1830_v16 = vld [vmem:[#allocation7 + $0x2c] ss:$16 sps:$4 sm:$0xff]  }
  0x50   :  { %v1833_v17 = vld [vmem:[#allocation7 + $0x44] ss:$16 sps:$4 sm:$0xff]   ;;  %v1828_v18 = vld [vmem:[#allocation7 + $0x28] ss:$16 sps:$4 sm:$0xff]   ;;  %v1831_v19 = vld [vmem:[#allocation7 + $0x40] ss:$16 sps:$4 sm:$0xff]  }
  0x51   :  { %159 = vmatpush1.bf16.msra.mxu0 %v1812_v4  ;;  %200 = vmatpush1.bf16.msra.mxu1 %v1818_v9  ;;  %v1836_v20 = vld [vmem:[#allocation7 + $0x4c] ss:$16 sps:$4 sm:$0xff]   ;;  %v1839_v21 = vld [vmem:[#allocation7 + $0x64] ss:$16 sps:$4 sm:$0xff]   ;;  %v1834_v22 = vld [vmem:[#allocation7 + $0x48] ss:$16 sps:$4 sm:$0xff]  }
  0x52   :  { %1036 = vmatprep.subr.bf16.mxu0 %v1821_v10  ;;  %1118 = vmatprep.subr.bf16.mxu1 %v1824_v12  ;;  %v1837_v23 = vld [vmem:[#allocation7 + $0x60] ss:$16 sps:$4 sm:$0xff]   ;;  %v1842_v24 = vld [vmem:[#allocation7 + $0x6c] ss:$16 sps:$4 sm:$0xff]   ;;  %v1845_v25 = vld [vmem:[#allocation7 + $0x84] ss:$16 sps:$4 sm:$0xff]   ;;  %v92_v12 = vlaneseq }
  0x53   :  { %v1840_v26 = vld [vmem:[#allocation7 + $0x68] ss:$16 sps:$4 sm:$0xff]   ;;  %v1843_v27 = vld [vmem:[#allocation7 + $0x80] ss:$16 sps:$4 sm:$0xff]   ;;  %v1848_v28 = vld [vmem:[#allocation7 + $0x8c] ss:$16 sps:$4 sm:$0xff]  }
  0x54   :  { %1578 = vmatmul.mubr.msk.bf16.vlgmr.msra.gmra.mrb[0].mxu0 %vm152_vm0, %v81_v7  ;;  %1579 = vmatmul.mubr.msk.bf16.vlgmr.msra.gmra.mrb[0].mxu1 %vm152_vm0, %v81_v7  ;;  %v1851_v29 = vld [vmem:[#allocation7 + $0xa4] ss:$16 sps:$4 sm:$0xff]   ;;  %v1846_v30 = vld [vmem:[#allocation7 + $0x88] ss:$16 sps:$4 sm:$0xff]   ;;  %v1849_v31 = vld [vmem:[#allocation7 + $0xa0] ss:$16 sps:$4 sm:$0xff]  }
  0x55   :  { %1037 = vmatpush1.bf16.msra.mxu0 %v1819_v11  ;;  %1119 = vmatpush1.bf16.msra.mxu1 %v1822_v14  ;;  %v1854_v32 = vld [vmem:[#allocation7 + $0xac] ss:$16 sps:$4 sm:$0xff]   ;;  %v1857_v33 = vld [vmem:[#allocation7 + $0xc4] ss:$16 sps:$4 sm:$0xff]   ;;  %v1852_v34 = vld [vmem:[#allocation7 + $0xa8] ss:$16 sps:$4 sm:$0xff]  }
  0x56   :  { %1038 = vmatprep.subr.bf16.mxu0 %v1827_v13  ;;  %1120 = vmatprep.subr.bf16.mxu1 %v1830_v16  ;;  %v1855_v35 = vld [vmem:[#allocation7 + $0xc0] ss:$16 sps:$4 sm:$0xff]   ;;  %v1860_v36 = vld [vmem:[#allocation7 + $0xcc] ss:$16 sps:$4 sm:$0xff]   ;;  %v1863_v37 = vld [vmem:[#allocation7 + $0xe4] ss:$16 sps:$4 sm:$0xff]  }
  0x57   :  { %v1858_v38 = vld [vmem:[#allocation7 + $0xc8] ss:$16 sps:$4 sm:$0xff]   ;;  %v1861_v39 = vld [vmem:[#allocation7 + $0xe0] ss:$16 sps:$4 sm:$0xff]   ;;  %v1866_v40 = vld [vmem:[#allocation7 + $0xec] ss:$16 sps:$4 sm:$0xff]  }
  0x58   :  { %v1869_v41 = vld [vmem:[#allocation7 + $0x104] ss:$16 sps:$4 sm:$0xff]   ;;  %v1864_v42 = vld [vmem:[#allocation7 + $0xe8] ss:$16 sps:$4 sm:$0xff]   ;;  %v1867_v43 = vld [vmem:[#allocation7 + $0x100] ss:$16 sps:$4 sm:$0xff]  }
  0x59   :  { %1039 = vmatpush1.bf16.msra.mxu0 %v1825_v15  ;;  %1121 = vmatpush1.bf16.msra.mxu1 %v1828_v18  ;;  %v1872_v44 = vld [vmem:[#allocation7 + $0x10c] ss:$16 sps:$4 sm:$0xff]   ;;  %v1875_v45 = vld [vmem:[#allocation7 + $0x124] ss:$16 sps:$4 sm:$0xff]   ;;  %v1870_v46 = vld [vmem:[#allocation7 + $0x108] ss:$16 sps:$4 sm:$0xff]  }
  0x5a   :  { %1040 = vmatprep.subr.bf16.mxu0 %v1833_v17  ;;  %1122 = vmatprep.subr.bf16.mxu1 %v1836_v20  ;;  %v1873_v47 = vld [vmem:[#allocation7 + $0x120] ss:$16 sps:$4 sm:$0xff]   ;;  %v1878_v48 = vld [vmem:[#allocation7 + $0x12c] ss:$16 sps:$4 sm:$0xff]   ;;  %v1881_v49 = vld [vmem:[#allocation7 + $0x144] ss:$16 sps:$4 sm:$0xff]  }
  0x5b   :  { %v1876_v50 = vld [vmem:[#allocation7 + $0x128] ss:$16 sps:$4 sm:$0xff]   ;;  %v1879_v51 = vld [vmem:[#allocation7 + $0x140] ss:$16 sps:$4 sm:$0xff]   ;;  %v1884_v52 = vld [vmem:[#allocation7 + $0x14c] ss:$16 sps:$4 sm:$0xff]  }
  0x5c   :  { %v1887_v53 = vld [vmem:[#allocation7 + $0x164] ss:$16 sps:$4 sm:$0xff]   ;;  %v1882_v54 = vld [vmem:[#allocation7 + $0x148] ss:$16 sps:$4 sm:$0xff]   ;;  %v1885_v55 = vld [vmem:[#allocation7 + $0x160] ss:$16 sps:$4 sm:$0xff]  }
  0x5d   :  { %1041 = vmatpush1.bf16.msra.mxu0 %v1831_v19  ;;  %1123 = vmatpush1.bf16.msra.mxu1 %v1834_v22  ;;  %v1890_v56 = vld [vmem:[#allocation7 + $0x16c] ss:$16 sps:$4 sm:$0xff]   ;;  %v1893_v57 = vld [vmem:[#allocation7 + $0x184] ss:$16 sps:$4 sm:$0xff]   ;;  %v1888_v58 = vld [vmem:[#allocation7 + $0x168] ss:$16 sps:$4 sm:$0xff]  }
  0x5e   :  { %1042 = vmatprep.subr.bf16.mxu0 %v1839_v21  ;;  %1124 = vmatprep.subr.bf16.mxu1 %v1842_v24  ;;  %v1891_v59 = vld [vmem:[#allocation7 + $0x180] ss:$16 sps:$4 sm:$0xff]   ;;  %v1896_v60 = vld [vmem:[#allocation7 + $0x18c] ss:$16 sps:$4 sm:$0xff]   ;;  %v1899_v61 = vld [vmem:[#allocation7 + $0x1a4] ss:$16 sps:$4 sm:$0xff]  }
  0x5f   :  { %v1894_v62 = vld [vmem:[#allocation7 + $0x188] ss:$16 sps:$4 sm:$0xff]   ;;  %v1897_v63 = vld [vmem:[#allocation7 + $0x1a0] ss:$16 sps:$4 sm:$0xff]   ;;  %v1902_v0 = vld [vmem:[#allocation7 + $0x1ac] ss:$16 sps:$4 sm:$0xff]  }
  0x60   :  { %v1900_v1 = vld [vmem:[#allocation7 + $0x1a8] ss:$16 sps:$4 sm:$0xff]   ;;  %v1905_v2 = vld [vmem:[#allocation7 + $0x1c4] ss:$16 sps:$4 sm:$0xff]   ;;  %v1908_v3 = vld [vmem:[#allocation7 + $0x1cc] ss:$16 sps:$4 sm:$0xff]  }
  0x61   :  { %1043 = vmatpush1.bf16.msra.mxu0 %v1837_v23  ;;  %1125 = vmatpush1.bf16.msra.mxu1 %v1840_v26  ;;  %v1903_v4 = vld [vmem:[#allocation7 + $0x1c0] ss:$16 sps:$4 sm:$0xff]   ;;  %v1906_v5 = vld [vmem:[#allocation7 + $0x1c8] ss:$16 sps:$4 sm:$0xff]   ;;  %v1911_v6 = vld [vmem:[#allocation7 + $0x1e4] ss:$16 sps:$4 sm:$0xff]  }
  0x62   :  { %1044 = vmatprep.subr.bf16.mxu0 %v1845_v25  ;;  %1126 = vmatprep.subr.bf16.mxu1 %v1848_v28  ;;  %v1914_v7 = vld [vmem:[#allocation7 + $0x1ec] ss:$16 sps:$4 sm:$0xff]   ;;  %v1909_v8 = vld [vmem:[#allocation7 + $0x1e0] ss:$16 sps:$4 sm:$0xff]   ;;  %v1912_v9 = vld [vmem:[#allocation7 + $0x1e8] ss:$16 sps:$4 sm:$0xff]  }
  0x63   :  { %v1917_v10 = vld [vmem:[#allocation7 + $0x204] ss:$16 sps:$4 sm:$0xff]   ;;  %v1920_v11 = vld [vmem:[#allocation7 + $0x20c] ss:$16 sps:$4 sm:$0xff]   ;;  %v2265_v13 = vshrl.u32 %v92_v12, 7  ;;  %s2170_s29 = smov [#allocation10]  }
  0x64   :  { %v2271_v15 = vld [vmem:[%s2319_s2] sm:$0xf]  ;;  %v1977_v12 = vld [vmem:[#allocation7 + $0x344] ss:$16 sps:$4 sm:$0xff]   ;;  %s1559_s30 = sshll.u32 %s2170_s29, 4  ;;  %s1560_s30 = int_to_ptr.vmem [resolvable:$true] %s1559_s30 }
  0x65   :  { %1045 = vmatpush1.bf16.msra.mxu0 %v1843_v27  ;;  %1127 = vmatpush1.bf16.msra.mxu1 %v1846_v30  ;;  %v94_v14 = vsub.s32 0, %v2265_v13  ;;  %v98_v16 = vsub.s32 1, %v2265_v13  ;;  %v106_v18 = vsub.s32 3, %v2265_v13  ;;  %s2131_s8 = scalar_lea.vmem %s1560_s30, 64  ;;  %p2136_p5 = scmp.lt.s32.totalorder %s1560_s30, %s1560_s30 }
  0x66   :  { %1046 = vmatprep.subr.bf16.mxu0 %v1851_v29  ;;  %1128 = vmatprep.subr.bf16.mxu1 %v1854_v32  ;;  %p2132_p4 = scmp.ne.s32.totalorder %s1560_s30, %s2131_s8  ;;  %p2137_p6 = scmp.lt.s32.totalorder %s2131_s8, %s2131_s8 }
  0x67   :  { %v95_v17 = vrot.slane %v2271_v15, %v94_v14  ;;  %v99_v19 = vrot.slane %v2271_v15, %v98_v16  ;;  %v107_v23 = vrot.slane %v2271_v15, %v106_v18 }
  0x68   :  { %p2138_p7 = por %p2137_p6, %p2136_p5 }
  0x69   :  { %1047 = vmatpush1.bf16.msra.mxu0 %v1849_v31  ;;  %1129 = vmatpush1.bf16.msra.mxu1 %v1852_v34  ;;  %v1915_v34 = vld [vmem:[#allocation7 + $0x200] ss:$16 sps:$4 sm:$0xff]  }
  0x6a   :  { %1048 = vmatprep.subr.bf16.mxu0 %v1857_v33  ;;  %1130 = vmatprep.subr.bf16.mxu1 %v1860_v36  ;;  %p2139_p8 = pnand %p2138_p7, %p2132_p4 }
  0x6d   :  { %1049 = vmatpush1.bf16.msra.mxu0 %v1855_v35  ;;  %1131 = vmatpush1.bf16.msra.mxu1 %v1858_v38  ;;  %v1918_v35 = vld [vmem:[#allocation7 + $0x208] ss:$16 sps:$4 sm:$0xff]   ;;  %v1923_v38 = vld [vmem:[#allocation7 + $0x224] ss:$16 sps:$4 sm:$0xff]  }
  0x6e   :  { %1050 = vmatprep.subr.bf16.mxu0 %v1863_v37  ;;  %1132 = vmatprep.subr.bf16.mxu1 %v1866_v40 }
  0x71   :  { %1051 = vmatpush1.bf16.msra.mxu0 %v1861_v39  ;;  %1133 = vmatpush1.bf16.msra.mxu1 %v1864_v42  ;;  %v1926_v39 = vld [vmem:[#allocation7 + $0x22c] ss:$16 sps:$4 sm:$0xff]   ;;  %v1921_v42 = vld [vmem:[#allocation7 + $0x220] ss:$16 sps:$4 sm:$0xff]  }
  0x72   :  { %1052 = vmatprep.subr.bf16.mxu0 %v1869_v41  ;;  %1134 = vmatprep.subr.bf16.mxu1 %v1872_v44  ;;  %v1929_v44 = vld [vmem:[#allocation7 + $0x244] ss:$16 sps:$4 sm:$0xff]  }
  0x75   :  { %1053 = vmatpush1.bf16.msra.mxu0 %v1867_v43  ;;  %1135 = vmatpush1.bf16.msra.mxu1 %v1870_v46  ;;  %v1924_v43 = vld [vmem:[#allocation7 + $0x228] ss:$16 sps:$4 sm:$0xff]   ;;  %v1927_v46 = vld [vmem:[#allocation7 + $0x240] ss:$16 sps:$4 sm:$0xff]  }
  0x76   :  { %1054 = vmatprep.subr.bf16.mxu0 %v1875_v45  ;;  %1136 = vmatprep.subr.bf16.mxu1 %v1878_v48  ;;  %v1932_v45 = vld [vmem:[#allocation7 + $0x24c] ss:$16 sps:$4 sm:$0xff]   ;;  %v1935_v48 = vld [vmem:[#allocation7 + $0x264] ss:$16 sps:$4 sm:$0xff]  }
  0x79   :  { %1055 = vmatpush1.bf16.msra.mxu0 %v1873_v47  ;;  %1137 = vmatpush1.bf16.msra.mxu1 %v1876_v50  ;;  %v1930_v47 = vld [vmem:[#allocation7 + $0x248] ss:$16 sps:$4 sm:$0xff]   ;;  %v1933_v50 = vld [vmem:[#allocation7 + $0x260] ss:$16 sps:$4 sm:$0xff]  }
  0x7a   :  { %1056 = vmatprep.subr.bf16.mxu0 %v1881_v49  ;;  %1138 = vmatprep.subr.bf16.mxu1 %v1884_v52  ;;  %v1938_v49 = vld [vmem:[#allocation7 + $0x26c] ss:$16 sps:$4 sm:$0xff]   ;;  %v1941_v52 = vld [vmem:[#allocation7 + $0x284] ss:$16 sps:$4 sm:$0xff]  }
  0x7d   :  { %1057 = vmatpush1.bf16.msra.mxu0 %v1879_v51  ;;  %1139 = vmatpush1.bf16.msra.mxu1 %v1882_v54  ;;  %v1936_v51 = vld [vmem:[#allocation7 + $0x268] ss:$16 sps:$4 sm:$0xff]   ;;  %v1939_v54 = vld [vmem:[#allocation7 + $0x280] ss:$16 sps:$4 sm:$0xff]  }
  0x7e   :  { %1058 = vmatprep.subr.bf16.mxu0 %v1887_v53  ;;  %1140 = vmatprep.subr.bf16.mxu1 %v1890_v56  ;;  %v1944_v53 = vld [vmem:[#allocation7 + $0x28c] ss:$16 sps:$4 sm:$0xff]   ;;  %v1947_v56 = vld [vmem:[#allocation7 + $0x2a4] ss:$16 sps:$4 sm:$0xff]  }
  0x81   :  { %1059 = vmatpush1.bf16.msra.mxu0 %v1885_v55  ;;  %1141 = vmatpush1.bf16.msra.mxu1 %v1888_v58  ;;  %v1942_v55 = vld [vmem:[#allocation7 + $0x288] ss:$16 sps:$4 sm:$0xff]   ;;  %v1945_v58 = vld [vmem:[#allocation7 + $0x2a0] ss:$16 sps:$4 sm:$0xff]  }
  0x82   :  { %1060 = vmatprep.subr.bf16.mxu0 %v1893_v57  ;;  %1142 = vmatprep.subr.bf16.mxu1 %v1896_v60  ;;  %v1950_v57 = vld [vmem:[#allocation7 + $0x2ac] ss:$16 sps:$4 sm:$0xff]   ;;  %v1953_v60 = vld [vmem:[#allocation7 + $0x2c4] ss:$16 sps:$4 sm:$0xff]  }
  0x85   :  { %1061 = vmatpush1.bf16.msra.mxu0 %v1891_v59  ;;  %1143 = vmatpush1.bf16.msra.mxu1 %v1894_v62  ;;  %v1948_v59 = vld [vmem:[#allocation7 + $0x2a8] ss:$16 sps:$4 sm:$0xff]   ;;  %v1951_v62 = vld [vmem:[#allocation7 + $0x2c0] ss:$16 sps:$4 sm:$0xff]  }
  0x86   :  { %1062 = vmatprep.subr.bf16.mxu0 %v1899_v61  ;;  %1144 = vmatprep.subr.bf16.mxu1 %v1902_v0  ;;  %v1956_v61 = vld [vmem:[#allocation7 + $0x2cc] ss:$16 sps:$4 sm:$0xff]   ;;  %v1959_v0 = vld [vmem:[#allocation7 + $0x2e4] ss:$16 sps:$4 sm:$0xff]  }
  0x89   :  { %1063 = vmatpush1.bf16.msra.mxu0 %v1897_v63  ;;  %1145 = vmatpush1.bf16.msra.mxu1 %v1900_v1  ;;  %v1954_v63 = vld [vmem:[#allocation7 + $0x2c8] ss:$16 sps:$4 sm:$0xff]   ;;  %v1962_v1 = vld [vmem:[#allocation7 + $0x2ec] ss:$16 sps:$4 sm:$0xff]  }
  0x8a   :  { %1064 = vmatprep.subr.bf16.mxu0 %v1905_v2  ;;  %1146 = vmatprep.subr.bf16.mxu1 %v1908_v3  ;;  %v1957_v2 = vld [vmem:[#allocation7 + $0x2e0] ss:$16 sps:$4 sm:$0xff]   ;;  %v1960_v3 = vld [vmem:[#allocation7 + $0x2e8] ss:$16 sps:$4 sm:$0xff]  }
  0x8d   :  { %1065 = vmatpush1.bf16.msra.mxu0 %v1903_v4  ;;  %1147 = vmatpush1.bf16.msra.mxu1 %v1906_v5  ;;  %v1965_v4 = vld [vmem:[#allocation7 + $0x304] ss:$16 sps:$4 sm:$0xff]   ;;  %v1968_v5 = vld [vmem:[#allocation7 + $0x30c] ss:$16 sps:$4 sm:$0xff]  }
  0x8e   :  { %1066 = vmatprep.subr.bf16.mxu0 %v1911_v6  ;;  %1148 = vmatprep.subr.bf16.mxu1 %v1914_v7  ;;  %v1963_v6 = vld [vmem:[#allocation7 + $0x300] ss:$16 sps:$4 sm:$0xff]   ;;  %v1966_v7 = vld [vmem:[#allocation7 + $0x308] ss:$16 sps:$4 sm:$0xff]  }
  0x91   :  { %1067 = vmatpush1.bf16.msra.mxu0 %v1909_v8  ;;  %1149 = vmatpush1.bf16.msra.mxu1 %v1912_v9  ;;  %v1971_v8 = vld [vmem:[#allocation7 + $0x324] ss:$16 sps:$4 sm:$0xff]   ;;  %v1974_v9 = vld [vmem:[#allocation7 + $0x32c] ss:$16 sps:$4 sm:$0xff]  }
  0x92   :  { %1077 = vmatprep.subr.bf16.mxu0 %v1917_v10  ;;  %1159 = vmatprep.subr.bf16.mxu1 %v1920_v11  ;;  %v1969_v10 = vld [vmem:[#allocation7 + $0x320] ss:$16 sps:$4 sm:$0xff]   ;;  %v1972_v11 = vld [vmem:[#allocation7 + $0x328] ss:$16 sps:$4 sm:$0xff]  }
 0x127   :  { %v190_v20 = vpop.f32.mrb[0].mxu0  ;;  %v2284_v28 = vpop.f32.mrb[0].mxu1 }
 0x128   :  { %v191_v21 = vadd.f32 %v190_v20, %v95_v17  ;;  %v192_v22 = vpop.f32.mrb[1].mxu0  ;;  %v233_v30 = vpop.f32.mrb[1].mxu1  ;;  %v1980_v17 = vld [vmem:[#allocation7 + $0x34c] ss:$16 sps:$4 sm:$0xff]   ;;  %v1978_v20 = vld [vmem:[#allocation7 + $0x348] ss:$16 sps:$4 sm:$0xff]  }
 0x129   :  { %v193_v24 = vadd.f32 %v192_v22, %v99_v19  ;;  %v194_v25 = vpop.f32.mrb[2].mxu0  ;;  %v234_v31 = vadd.f32 %v233_v30, %v107_v23  ;;  %v235_v32 = vpop.f32.mrb[2].mxu1  ;;  %v1975_v19 = vld [vmem:[#allocation7 + $0x340] ss:$16 sps:$4 sm:$0xff]   ;;  %v1986_v22 = vld [vmem:[#allocation7 + $0x36c] ss:$16 sps:$4 sm:$0xff]  }
 0x12a   :  { %v238_v26 = vmax.f32 %v191_v21, 0.0  ;;  %v195_v27 = vpop.f32.mrb[3].mxu0  ;;  %v236_v36 = vpop.f32.mrb[3].mxu1  ;;  %v1983_v21 = vld [vmem:[#allocation7 + $0x364] ss:$16 sps:$4 sm:$0xff]   ;;  %v102_v30 = vsub.s32 2, %v2265_v13 }
 0x12b   :  { %v239_v29 = vmax.f32 %v193_v24, 0.0  ;;  %v241_v40 = vmax.f32 %v234_v31, 0.0  ;;  %v1981_v23 = vld [vmem:[#allocation7 + $0x360] ss:$16 sps:$4 sm:$0xff]   ;;  %v1984_v24 = vld [vmem:[#allocation7 + $0x368] ss:$16 sps:$4 sm:$0xff]  }
 0x12c   :  { %v242_v37 = vpack.c.bf16 %v238_v26, %v238_v26  ;;  %v1989_v25 = vld [vmem:[#allocation7 + $0x384] ss:$16 sps:$4 sm:$0xff]   ;;  %v1992_v26 = vld [vmem:[#allocation7 + $0x38c] ss:$16 sps:$4 sm:$0xff]   ;;  %v1987_v27 = vld [vmem:[#allocation7 + $0x380] ss:$16 sps:$4 sm:$0xff]  }
 0x12d   :  { %v243_v33 = vpack.c.bf16 %v239_v29, %v239_v29  ;;  %v245_v41 = vpack.c.bf16 %v241_v40, %v241_v40  ;;  %v1990_v29 = vld [vmem:[#allocation7 + $0x388] ss:$16 sps:$4 sm:$0xff]   ;;  %v1995_v31 = vld [vmem:[#allocation7 + $0x3a4] ss:$16 sps:$4 sm:$0xff]   ;;  %v1998_v32 = vld [vmem:[#allocation7 + $0x3ac] ss:$16 sps:$4 sm:$0xff]  }
 0x12e   :  { %v2001_v36 = vld [vmem:[#allocation7 + $0x3c4] ss:$16 sps:$4 sm:$0xff]  }
 0x12f   :  { %1068 = vmatprep.mubr.bf16.mxu0 %v243_v33  ;;  %1150 = vmatprep.mubr.bf16.mxu1 %v243_v33  ;;  %v1993_v33 = vld [vmem:[#allocation7 + $0x3a0] ss:$16 sps:$4 sm:$0xff]  }
 0x130   :  { %1069 = vmatmul.mubr.bf16.vlgmr.msra.gmra.mrb[4].mxu0 %v242_v37  ;;  %1151 = vmatmul.mubr.bf16.vlgmr.msra.gmra.mrb[4].mxu1 %v242_v37  ;;  %v2004_v37 = vld [vmem:[#allocation7 + $0x3cc] ss:$16 sps:$4 sm:$0xff]  }
 0x131   :  { %1078 = vmatpush1.bf16.msra.mxu0 %v1915_v34  ;;  %1160 = vmatpush1.bf16.msra.mxu1 %v1918_v35  ;;  %v1996_v34 = vld [vmem:[#allocation7 + $0x3a8] ss:$16 sps:$4 sm:$0xff]   ;;  %v103_v35 = vrot.slane %v2271_v15, %v102_v30  ;;  %v2011_v15 = vld [vmem:[#allocation8 + $0x40] sm:$0xff]  }
 0x132   :  { %1079 = vmatprep.subr.bf16.mxu0 %v1923_v38  ;;  %1161 = vmatprep.subr.bf16.mxu1 %v1926_v39  ;;  %v1999_v38 = vld [vmem:[#allocation7 + $0x3c0] ss:$16 sps:$4 sm:$0xff]   ;;  %v2002_v39 = vld [vmem:[#allocation7 + $0x3c8] ss:$16 sps:$4 sm:$0xff]  }
 0x133   :  { %1109 = vmatprep.mubr.bf16.mxu0 %v245_v41  ;;  %1191 = vmatprep.mubr.bf16.mxu1 %v245_v41  ;;  %v232_v40 = vadd.f32 %v2284_v28, %v103_v35  ;;  %v2007_v41 = vld [vmem:[#allocation7 + $0x3e4] ss:$16 sps:$4 sm:$0xff]   ;;  %v2015_v28 = vld [vmem:[#allocation8 + $0x48] sm:$0xff]  }
 0x135   :  { %1080 = vmatpush1.bf16.msra.mxu0 %v1921_v42  ;;  %1162 = vmatpush1.bf16.msra.mxu1 %v1924_v43  ;;  %v2010_v42 = vld [vmem:[#allocation7 + $0x3ec] ss:$16 sps:$4 sm:$0xff]   ;;  %v2005_v43 = vld [vmem:[#allocation7 + $0x3e0] ss:$16 sps:$4 sm:$0xff]  }
 0x136   :  { %1081 = vmatprep.subr.bf16.mxu0 %v1929_v44  ;;  %1163 = vmatprep.subr.bf16.mxu1 %v1932_v45  ;;  %v2008_v44 = vld [vmem:[#allocation7 + $0x3e8] ss:$16 sps:$4 sm:$0xff]   ;;  %v240_v45 = vmax.f32 %v232_v40, 0.0 }
 0x139   :  { %1082 = vmatpush1.bf16.msra.mxu0 %v1927_v46  ;;  %1164 = vmatpush1.bf16.msra.mxu1 %v1930_v47  ;;  %v2012_v46 = vld [vmem:[#allocation8 + $0xc0] sm:$0xff]  }
 0x13a   :  { %1083 = vmatprep.subr.bf16.mxu0 %v1935_v48  ;;  %1165 = vmatprep.subr.bf16.mxu1 %v1938_v49  ;;  %v2013_v47 = vld [vmem:[#allocation8] sm:$0xff]   ;;  %v244_v49 = vpack.c.bf16 %v240_v45, %v240_v45 }
 0x13b   :  { %v2014_v48 = vld [vmem:[#allocation8 + $0x80] sm:$0xff]  }
 0x13d   :  { %1084 = vmatpush1.bf16.msra.mxu0 %v1933_v50  ;;  %1166 = vmatpush1.bf16.msra.mxu1 %v1936_v51  ;;  %v2016_v50 = vld [vmem:[#allocation8 + $0xc8] sm:$0xff]  }
 0x13e   :  { %1085 = vmatprep.subr.bf16.mxu0 %v1941_v52  ;;  %1167 = vmatprep.subr.bf16.mxu1 %v1944_v53  ;;  %v2017_v51 = vld [vmem:[#allocation8 + $0x8] sm:$0xff]   ;;  %v2019_v53 = vld [vmem:[#allocation8 + $0x50] sm:$0xff]  }
 0x13f   :  { %v2018_v52 = vld [vmem:[#allocation8 + $0x88] sm:$0xff]  }
 0x141   :  { %1086 = vmatpush1.bf16.msra.mxu0 %v1939_v54  ;;  %1168 = vmatpush1.bf16.msra.mxu1 %v1942_v55  ;;  %v2020_v54 = vld [vmem:[#allocation8 + $0xd0] sm:$0xff]  }
 0x142   :  { %1087 = vmatprep.subr.bf16.mxu0 %v1947_v56  ;;  %1169 = vmatprep.subr.bf16.mxu1 %v1950_v57  ;;  %v2021_v55 = vld [vmem:[#allocation8 + $0x10] sm:$0xff]   ;;  %v2023_v57 = vld [vmem:[#allocation8 + $0x58] sm:$0xff]  }
 0x143   :  { %v2022_v56 = vld [vmem:[#allocation8 + $0x90] sm:$0xff]  }
 0x145   :  { %1088 = vmatpush1.bf16.msra.mxu0 %v1945_v58  ;;  %1170 = vmatpush1.bf16.msra.mxu1 %v1948_v59  ;;  %v2024_v58 = vld [vmem:[#allocation8 + $0xd8] sm:$0xff]  }
 0x146   :  { %1089 = vmatprep.subr.bf16.mxu0 %v1953_v60  ;;  %1171 = vmatprep.subr.bf16.mxu1 %v1956_v61  ;;  %v2025_v59 = vld [vmem:[#allocation8 + $0x18] sm:$0xff]   ;;  %v2027_v61 = vld [vmem:[#allocation8 + $0x60] sm:$0xff]  }
 0x147   :  { %v2026_v60 = vld [vmem:[#allocation8 + $0x98] sm:$0xff]  }
 0x149   :  { %1090 = vmatpush1.bf16.msra.mxu0 %v1951_v62  ;;  %1172 = vmatpush1.bf16.msra.mxu1 %v1954_v63  ;;  %v2028_v62 = vld [vmem:[#allocation8 + $0xe0] sm:$0xff]  }
 0x14a   :  { %1091 = vmatprep.subr.bf16.mxu0 %v1959_v0  ;;  %1173 = vmatprep.subr.bf16.mxu1 %v1962_v1  ;;  %v2029_v63 = vld [vmem:[#allocation8 + $0x20] sm:$0xff]   ;;  %v2031_v1 = vld [vmem:[#allocation8 + $0x68] sm:$0xff]  }
 0x14b   :  { %v2030_v0 = vld [vmem:[#allocation8 + $0xa0] sm:$0xff]  }
 0x14d   :  { %1092 = vmatpush1.bf16.msra.mxu0 %v1957_v2  ;;  %1174 = vmatpush1.bf16.msra.mxu1 %v1960_v3  ;;  %v2032_v2 = vld [vmem:[#allocation8 + $0xe8] sm:$0xff]  }
 0x14e   :  { %1093 = vmatprep.subr.bf16.mxu0 %v1965_v4  ;;  %1175 = vmatprep.subr.bf16.mxu1 %v1968_v5  ;;  %v2033_v3 = vld [vmem:[#allocation8 + $0x28] sm:$0xff]   ;;  %v2035_v5 = vld [vmem:[#allocation8 + $0x70] sm:$0xff]  }
 0x14f   :  { %v2034_v4 = vld [vmem:[#allocation8 + $0xa8] sm:$0xff]  }
 0x151   :  { %1094 = vmatpush1.bf16.msra.mxu0 %v1963_v6  ;;  %1176 = vmatpush1.bf16.msra.mxu1 %v1966_v7  ;;  %v2036_v6 = vld [vmem:[#allocation8 + $0xf0] sm:$0xff]  }
 0x152   :  { %1095 = vmatprep.subr.bf16.mxu0 %v1971_v8  ;;  %1177 = vmatprep.subr.bf16.mxu1 %v1974_v9  ;;  %v2037_v7 = vld [vmem:[#allocation8 + $0x30] sm:$0xff]   ;;  %v2039_v9 = vld [vmem:[#allocation8 + $0x78] sm:$0xff]  }
 0x153   :  { %v2038_v8 = vld [vmem:[#allocation8 + $0xb0] sm:$0xff]  }
 0x155   :  { %1096 = vmatpush1.bf16.msra.mxu0 %v1969_v10  ;;  %1178 = vmatpush1.bf16.msra.mxu1 %v1972_v11  ;;  %v2040_v10 = vld [vmem:[#allocation8 + $0xf8] sm:$0xff]  }
 0x156   :  { %1097 = vmatprep.subr.bf16.mxu0 %v1977_v12  ;;  %1179 = vmatprep.subr.bf16.mxu1 %v1980_v17  ;;  %v2041_v11 = vld [vmem:[#allocation8 + $0x38] sm:$0xff]  }
 0x157   :  { %v2042_v12 = vld [vmem:[#allocation8 + $0xb8] sm:$0xff]  }
 0x158   :  { %v374_v17 = vld [vmem:[%s2321_s4] sm:$0xf] }
 0x159   :  { %1098 = vmatpush1.bf16.msra.mxu0 %v1975_v19  ;;  %1180 = vmatpush1.bf16.msra.mxu1 %v1978_v20  ;;  %v379_v19 = vrot.slane %v374_v17, %v94_v14  ;;  %v387_v20 = vrot.slane %v374_v17, %v102_v30 }
 0x15a   :  { %1099 = vmatprep.subr.bf16.mxu0 %v1983_v21  ;;  %1181 = vmatprep.subr.bf16.mxu1 %v1986_v22  ;;  %v383_v21 = vrot.slane %v374_v17, %v98_v16  ;;  %v391_v22 = vrot.slane %v374_v17, %v106_v18 }
 0x15d   :  { %1100 = vmatpush1.bf16.msra.mxu0 %v1981_v23  ;;  %1182 = vmatpush1.bf16.msra.mxu1 %v1984_v24 }
 0x15e   :  { %1101 = vmatprep.subr.bf16.mxu0 %v1989_v25  ;;  %1183 = vmatprep.subr.bf16.mxu1 %v1992_v26 }
 0x161   :  { %1102 = vmatpush1.bf16.msra.mxu0 %v1987_v27  ;;  %1184 = vmatpush1.bf16.msra.mxu1 %v1990_v29 }
 0x162   :  { %1103 = vmatprep.subr.bf16.mxu0 %v1995_v31  ;;  %1185 = vmatprep.subr.bf16.mxu1 %v1998_v32 }
 0x165   :  { %1104 = vmatpush1.bf16.msra.mxu0 %v1993_v33  ;;  %1186 = vmatpush1.bf16.msra.mxu1 %v1996_v34 }
 0x166   :  { %1105 = vmatprep.subr.bf16.mxu0 %v2001_v36  ;;  %1187 = vmatprep.subr.bf16.mxu1 %v2004_v37 }
 0x169   :  { %1106 = vmatpush1.bf16.msra.mxu0 %v1999_v38  ;;  %1188 = vmatpush1.bf16.msra.mxu1 %v2002_v39 }
 0x16a   :  { %1107 = vmatprep.subr.bf16.mxu0 %v2007_v41  ;;  %1189 = vmatprep.subr.bf16.mxu1 %v2010_v42  ;;  %v1708_v42 = vld [vmem:[%s2323_s6] ss:$0 sm:$0xff] }
 0x16d   :  { %1108 = vmatpush1.bf16.msra.mxu0 %v2005_v43  ;;  %1190 = vmatpush1.bf16.msra.mxu1 %v2008_v44 }
 0x16e   :  { %1741 = vmatprep.subr.bf16.mxu0 %v2011_v15  ;;  %1763 = vmatprep.subr.bf16.mxu1 %v2012_v46 }
 0x170   :  { %1110 = vmatmul.mubr.bf16.vlgmr.msra.gmra.mrb[4].mxu0 %v244_v49  ;;  %1192 = vmatmul.mubr.bf16.vlgmr.msra.gmra.mrb[4].mxu1 %v244_v49 }
 0x171   :  { %1742 = vmatpush3.bf16.msra.mxu0 %v2013_v47  ;;  %1764 = vmatpush3.bf16.msra.mxu1 %v2014_v48 }
 0x172   :  { %1743 = vmatprep.subr.bf16.mxu0 %v2015_v28  ;;  %1765 = vmatprep.subr.bf16.mxu1 %v2016_v50 }
 0x175   :  { %1744 = vmatpush3.bf16.msra.mxu0 %v2017_v51  ;;  %1766 = vmatpush3.bf16.msra.mxu1 %v2018_v52 }
 0x176   :  { %1745 = vmatprep.subr.bf16.mxu0 %v2019_v53  ;;  %1767 = vmatprep.subr.bf16.mxu1 %v2020_v54 }
 0x179   :  { %1746 = vmatpush3.bf16.msra.mxu0 %v2021_v55  ;;  %1768 = vmatpush3.bf16.msra.mxu1 %v2022_v56 }
 0x17a   :  { %1747 = vmatprep.subr.bf16.mxu0 %v2023_v57  ;;  %1769 = vmatprep.subr.bf16.mxu1 %v2024_v58 }
 0x17d   :  { %1748 = vmatpush3.bf16.msra.mxu0 %v2025_v59  ;;  %1770 = vmatpush3.bf16.msra.mxu1 %v2026_v60 }
 0x17e   :  { %1749 = vmatprep.subr.bf16.mxu0 %v2027_v61  ;;  %1771 = vmatprep.subr.bf16.mxu1 %v2028_v62 }
 0x181   :  { %1750 = vmatpush3.bf16.msra.mxu0 %v2029_v63  ;;  %1772 = vmatpush3.bf16.msra.mxu1 %v2030_v0 }
 0x182   :  { %1751 = vmatprep.subr.bf16.mxu0 %v2031_v1  ;;  %1773 = vmatprep.subr.bf16.mxu1 %v2032_v2 }
 0x185   :  { %1752 = vmatpush3.bf16.msra.mxu0 %v2033_v3  ;;  %1774 = vmatpush3.bf16.msra.mxu1 %v2034_v4 }
 0x186   :  { %1753 = vmatprep.subr.bf16.mxu0 %v2035_v5  ;;  %1775 = vmatprep.subr.bf16.mxu1 %v2036_v6 }
 0x189   :  { %1754 = vmatpush3.bf16.msra.mxu0 %v2037_v7  ;;  %1776 = vmatpush3.bf16.msra.mxu1 %v2038_v8 }
 0x18a   :  { %1755 = vmatprep.subr.bf16.mxu0 %v2039_v9  ;;  %1777 = vmatprep.subr.bf16.mxu1 %v2040_v10 }
 0x18d   :  { %1756 = vmatpush3.bf16.msra.mxu0 %v2041_v11  ;;  %1778 = vmatpush3.bf16.msra.mxu1 %v2042_v12 }
 0x243   :  { %v1111_v23 = vpop.f32.mrb[4].mxu0  ;;  %v1193_v24 = vpop.f32.mrb[4].mxu1 }
 0x244   :  { %v1785_v25 = vadd.f32 %v1111_v23, %v379_v19  ;;  %v1787_v26 = vadd.f32 %v1193_v24, %v387_v20  ;;  %v1113_v27 = vpop.f32.mrb[5].mxu0  ;;  %v1195_v29 = vpop.f32.mrb[5].mxu1 }
 0x245   :  { %v1786_v31 = vadd.f32 %v1113_v27, %v383_v21  ;;  %v1788_v32 = vadd.f32 %v1195_v29, %v391_v22  ;;  %v1115_v33 = vpop.f32.mrb[6].mxu0  ;;  %v1197_v34 = vpop.f32.mrb[6].mxu1 }
 0x246   :  { %v1200_v14 = vmax.f32 %v1785_v25, 0.0  ;;  %v1202_v35 = vmax.f32 %v1787_v26, 0.0  ;;  %v1116_v36 = vpop.f32.mrb[7].mxu0  ;;  %v1198_v30 = vpop.f32.mrb[7].mxu1 }
 0x247   :  { %v1201_v37 = vmax.f32 %v1786_v31, 0.0  ;;  %v1203_v38 = vmax.f32 %v1788_v32, 0.0 }
 0x248   :  { %v1204_v13 = vpack.c.bf16 %v1200_v14, %v1200_v14  ;;  %v1206_v18 = vpack.c.bf16 %v1202_v35, %v1202_v35 }
 0x249   :  { %v1205_v16 = vpack.c.bf16 %v1201_v37, %v1201_v37  ;;  %v1207_v39 = vpack.c.bf16 %v1203_v38, %v1203_v38 }
 0x24b   :  { %1503 = vmatprep.mubr.bf16.mxu0 %v1205_v16  ;;  %1543 = vmatprep.mubr.bf16.mxu1 %v1207_v39 }
 0x24c   :  { %1504 = vmatmul.mubr.bf16.vlgmr.msra.gmra.mrb[8].mxu0 %v1204_v13  ;;  %1544 = vmatmul.mubr.bf16.vlgmr.msra.gmra.mrb[8].mxu1 %v1206_v18 }
 0x31f   :  { %v1757_v40 = vpop.f32.mrb[8].mxu0  ;;  %v1779_v41 = vpop.f32.mrb[8].mxu1 }
 0x320   :  { %v1758_v43 = vpop.f32.mrb[9].mxu0  ;;  %v1780_v44 = vpop.f32.mrb[9].mxu1 }
 0x321   :  { %v1759_v45 = vadd.f32 %v1758_v43, %v1757_v40  ;;  %v1781_v15 = vadd.f32 %v1780_v44, %v1779_v41  ;;  %v1760_v46 = vpop.f32.mrb[10].mxu0  ;;  %v1782_v47 = vpop.f32.mrb[10].mxu1 }
 0x322   :  { %v1761_v48 = vpop.f32.mrb[11].mxu0  ;;  %v1783_v49 = vpop.f32.mrb[11].mxu1 }
 0x323   :  { %v1506_v28 = vadd.f32 %v1759_v45, %v1708_v42 }
 0x325   :  { %v1546_v50 = vadd.f32 %v1781_v15, %v1506_v28 }
 0x327   :  { %v1551_v51 = vpack.c.bf16 %v1546_v50, %v1546_v50 }
 0x329   :  { %1552 = vst [vmem:[#allocation10] sm:$0xf] %v1551_v51 }
 0x32a   :  { %2142 = shalt.err (!%p2139_p8)
}
 0x32b   :  { %s2143_s10 = scalar_lea.hbm %s2324_s7, 64 }
 0x32c   :  { %p2144_p9 = scmp.ne.s32.totalorder %s2324_s7, %s2143_s10  ;;  %p2147_p10 = scmp.lt.u32.totalorder %s2143_s10, %s2324_s7 }
 0x32e   :  { %p2149_p11 = pnand %p2147_p10, %p2144_p9 }
 0x330   :  { %2152 = shalt.err (!%p2149_p11)
}
 0x331   :  { %1562 = dma.vmem_to_hbm [thread:$0]  %s1560_s30, 64, %s2324_s7, [#allocation4]  }
 0x332   :  { %2159 = dma.done.wait [#allocation4], 64  }
 0x333   :  { %2160 = vsyncadd [#allocation4], 4294967232 }
 0x334   :  { %1566 = vsyncpa [#allocation3], 1 }
 0x335   :  { %1567 = vsyncpa [#allocation6], 1 }
 0x336   :  { %1568 = vsyncpa [#allocation9], 1 }
 0x337   :  { %1569 = vsyncpa [#allocation4], 1 }

</bundles_post_ra>
